<compile_context>
chip_gen: v7x
topology: tpu7x:2x2x1
jax: 0.10.0
libtpu: 0.0.40
codegen_flags: <defaults>
</compile_context>

<pallas_src>
import jax
import jax.numpy as jnp
from jax.experimental import pallas as pl
from jax.experimental.pallas import tpu as pltpu


# Rows per grid step. At K=32 / R=128 the per-step footprint is tiny
# (x tile 64 KiB bf16, out tile 512 KiB f32), so double-buffering is cheap
# and the total stays far under v7x's 64 MiB VMEM.
_TILE_N_MAX = 1024


def _linear_kernel(x_ref, w_ref, b_ref, o_ref):
    # y = x @ W + b : MXU matmul (bf16 operands, f32 accumulation) + f32 bias add (VPU).
    acc = jnp.dot(x_ref[...], w_ref[...], preferred_element_type=jnp.float32)
    o_ref[...] = (acc + b_ref[...]).astype(o_ref.dtype)


@jax.jit
def hidden2forcefield(hidden_state, weight_t, bias):
    """Forward pass of Hidden2ForceField (torch.nn.Linear(hidden_dim, resolution)).

    hidden_state: (..., hidden_dim) float32
    weight_t:     (hidden_dim, resolution) float32  (transpose of torch Linear.weight)
    bias:         (resolution,) float32
    returns:      (..., resolution) float32
    """
    hidden_dim, resolution = weight_t.shape
    lead_shape = hidden_state.shape[:-1]
    x2d = hidden_state.reshape(-1, hidden_dim)
    n = x2d.shape[0]
    out_dtype = hidden_state.dtype

    # bf16 operands for the MXU; accumulation & bias add remain f32 inside the kernel.
    x_bf16 = x2d.astype(jnp.bfloat16)
    w_bf16 = weight_t.astype(jnp.bfloat16)
    b2d = bias.reshape(1, resolution).astype(jnp.float32)

    # Tile along N only. If everything fits in one tile, the block equals the full
    # array dims (exempt from the (8,128) divisibility rule); otherwise use 1024-row
    # blocks and let Pallas mask the partial tail block.
    tile_n = n if n <= _TILE_N_MAX else _TILE_N_MAX
    grid = (pl.cdiv(n, tile_n),)

    cost = pl.CostEstimate(
        flops=2 * n * hidden_dim * resolution,
        bytes_accessed=(2 * n * hidden_dim            # x (bf16)
                        + 2 * hidden_dim * resolution  # W (bf16)
                        + 4 * resolution               # bias (f32)
                        + jnp.dtype(out_dtype).itemsize * n * resolution),  # out
        transcendentals=0,
    )

    out = pl.pallas_call(
        _linear_kernel,
        out_shape=jax.ShapeDtypeStruct((n, resolution), out_dtype),
        grid_spec=pltpu.PrefetchScalarGridSpec(
            num_scalar_prefetch=0,
            grid=grid,
            in_specs=[
                pl.BlockSpec((tile_n, hidden_dim), lambda i: (i, 0)),      # x: tiled over N
                pl.BlockSpec((hidden_dim, resolution), lambda i: (0, 0)),  # W: resident
                pl.BlockSpec((1, resolution), lambda i: (0, 0)),           # b: resident
            ],
            out_specs=pl.BlockSpec((tile_n, resolution), lambda i: (i, 0)),
        ),
        compiler_params=pltpu.CompilerParams(
            dimension_semantics=("parallel",)),  # shardable across v7x's 2 TCs
        cost_estimate=cost,
    )(x_bf16, w_bf16, b2d)

    return out.reshape(*lead_shape, resolution)


def init_params(key, hidden_dim, resolution):
    """Deterministic init mirroring torch.nn.Linear defaults
    (uniform(-1/sqrt(fan_in), 1/sqrt(fan_in)))."""
    k_w, k_b = jax.random.split(key)
    bound = 1.0 / jnp.sqrt(jnp.float32(hidden_dim))
    # torch stores weight as (resolution, hidden_dim); we keep the transpose (H, R).
    weight_t = jax.random.uniform(
        k_w, (hidden_dim, resolution), jnp.float32, -bound, bound)
    bias = jax.random.uniform(
        k_b, (resolution,), jnp.float32, -bound, bound)
    return weight_t, bias


if __name__ == "__main__":
    hidden_dim = 32
    resolution = 128
    seq_len, num_tracks = 8, 6  # small shapes: a few timesteps x pedestrians

    key = jax.random.PRNGKey(0)
    k_x, k_p, k_x2 = jax.random.split(key, 3)

    weight_t, bias = init_params(k_p, hidden_dim, resolution)

    # Reference with the same bf16-operand / f32-accumulate math as the kernel.
    def ref_fn(x, w, b):
        acc = jnp.dot(x.reshape(-1, hidden_dim).astype(jnp.bfloat16),
                      w.astype(jnp.bfloat16),
                      preferred_element_type=jnp.float32) + b
        return acc.reshape(*x.shape[:-1], resolution)

    # --- Small multi-leading-dim input (single block path) ---
    hidden_state = jax.random.normal(
        k_x, (seq_len, num_tracks, hidden_dim), jnp.float32)
    force_field = hidden2forcefield(hidden_state, weight_t, bias)
    jax.block_until_ready(force_field)

    assert force_field.shape == (seq_len, num_tracks, resolution)
    assert jnp.allclose(force_field, ref_fn(hidden_state, weight_t, bias),
                        atol=2e-3, rtol=2e-3)
    # Sanity check against full-f32 math (difference is only bf16 operand rounding).
    ref_f32 = hidden_state @ weight_t + bias
    assert jnp.allclose(force_field, ref_f32, atol=5e-2, rtol=5e-2)

    # --- Larger N exercising the multi-block grid + masked tail block ---
    n_big = 2600  # grid = 3: two full 1024-row tiles + a 552-row masked tail
    x_big = jax.random.normal(k_x2, (n_big, hidden_dim), jnp.float32)
    out_big = hidden2forcefield(x_big, weight_t, bias)
    jax.block_until_ready(out_big)

    assert out_big.shape == (n_big, resolution)
    assert jnp.allclose(out_big, ref_fn(x_big, weight_t, bias),
                        atol=2e-3, rtol=2e-3)

    print("KERNEL_OK")
</pallas_src>

<mosaic_0001>
module attributes {stable_mosaic.version = 11 : i64} {
  func.func @_linear_kernel(%arg0: i32, %arg1: memref<48x32xbf16, #tpu.memory_space<vmem>>, %arg2: memref<32x128xbf16, #tpu.memory_space<vmem>>, %arg3: memref<1x128xf32, #tpu.memory_space<vmem>>, %arg4: memref<48x128xf32, #tpu.memory_space<vmem>>) attributes {dimension_semantics = [#tpu.dimension_semantics<parallel>], iteration_bounds = array<i64: 1>, scalar_prefetch = 0 : i64, scratch_operands = 0 : i64, tpu.core_type = #tpu.core_type<tc>, window_params = [{transform_indices = @transform_0, window_bounds = array<i64: 48, 32>}, {pipeline_mode = #tpu.pipeline_mode<synchronous>, transform_indices = @transform_1, window_bounds = array<i64: 32, 128>}, {pipeline_mode = #tpu.pipeline_mode<synchronous>, transform_indices = @transform_2, window_bounds = array<i64: 1, 128>}, {transform_indices = @transform_3, window_bounds = array<i64: 48, 128>}]} {
    %c0 = arith.constant 0 : index
    %c0_0 = arith.constant 0 : index
    %0 = vector.load %arg1[%c0, %c0_0] : memref<48x32xbf16, #tpu.memory_space<vmem>>, vector<48x32xbf16>
    %c0_1 = arith.constant 0 : index
    %c0_2 = arith.constant 0 : index
    %1 = vector.load %arg2[%c0_1, %c0_2] : memref<32x128xbf16, #tpu.memory_space<vmem>>, vector<32x128xbf16>
    %cst = arith.constant dense<0.000000e+00> : vector<48x128xf32>
    %2 = tpu.matmul %0, %1, %cst {dimension_numbers = #tpu.dot_dimension_numbers<[1], [0], [0], [1], [0, 0, 1, 1], [], []>} : vector<48x32xbf16>, vector<32x128xbf16>, vector<48x128xf32> -> vector<48x128xf32>
    %c0_3 = arith.constant 0 : index
    %c0_4 = arith.constant 0 : index
    %3 = vector.load %arg3[%c0_3, %c0_4] : memref<1x128xf32, #tpu.memory_space<vmem>>, vector<1x128xf32>
    %4 = vector.broadcast %3 : vector<1x128xf32> to vector<48x128xf32>
    %5 = arith.addf %2, %4 : vector<48x128xf32>
    %c0_5 = arith.constant 0 : index
    %c0_6 = arith.constant 0 : index
    %6 = vector.load %arg4[%c0_5, %c0_6] : memref<48x128xf32, #tpu.memory_space<vmem>>, vector<48x128xf32>
    tpu.vector_store %arg4[%c0_5, %c0_6], %5 {strides = array<i32>} : memref<48x128xf32, #tpu.memory_space<vmem>>, vector<48x128xf32>,
    return
  }
  func.func @transform_0(%arg0: i32) -> (i32, i32) {
    %c0_i32 = arith.constant 0 : i32
    %c0_i32_0 = arith.constant 0 : i32
    return %arg0, %c0_i32 : i32, i32
  }
  func.func @transform_1(%arg0: i32) -> (i32, i32) {
    %c0_i32 = arith.constant 0 : i32
    %c0_i32_0 = arith.constant 0 : i32
    %c0_i32_1 = arith.constant 0 : i32
    return %c0_i32, %c0_i32_0 : i32, i32
  }
  func.func @transform_2(%arg0: i32) -> (i32, i32) {
    %c0_i32 = arith.constant 0 : i32
    %c0_i32_0 = arith.constant 0 : i32
    %c0_i32_1 = arith.constant 0 : i32
    return %c0_i32, %c0_i32_0 : i32, i32
  }
  func.func @transform_3(%arg0: i32) -> (i32, i32) {
    %c0_i32 = arith.constant 0 : i32
    %c0_i32_0 = arith.constant 0 : i32
    return %arg0, %c0_i32 : i32, i32
  }
}

</mosaic_0001>

<bundles_post_ra>
// kernel: hidden2forcefield.1
= control target key start
LH: loop header
LB: loop body
LE: loop exit
PB: predicated region body
PF: predicated region fallthrough
CT: control target
= control target key end

     0   :  { %v177_v0 = vmov 0.0   ;;  %vm178_vm0 = vmmov 0   ;;  %vm59_vm1 = vcmask 261120   ;;  %s238_s1 = inlined_call_operand.vmem [shape: bf16[32,128], index: 1, kind: input, shape index: {}]   ;;  %s239_s0 = inlined_call_operand.vmem [shape: bf16[48,32], index: 0, kind: input, shape index: {}]   ;;  %s240_s2 = inlined_call_operand.vmem [shape: f32[1,128], index: 2, kind: input, shape index: {}]   ;;  %s241_s3 = inlined_call_operand.vmem [shape: f32[48,128], index: 3, kind: output, shape index: {}]  }
   0x1   :  { %166 = vmatprep.subr.bf16.mxu1 %v177_v0  ;;  %v172_v1 = vld [vmem:[%s238_s1] sm:$0xff]   ;;  %150 = vmatprep.subr.bf16.mxu0 %v177_v0  ;;  %v173_v2 = vld [vmem:[%s238_s1 + $0x8] sm:$0xff]   ;;  %v176_v5 = vld [vmem:[%s239_s0 + $0x10] sm:$0xff]  }
   0x2   :  { %158 = vmatprep.mubr.msk.bf16.mxu1 %vm178_vm0, %v177_v0  ;;  %154 = vmatprep.mubr.msk.bf16.mxu0 %vm178_vm0, %v177_v0  ;;  %v174_v3 = vld [vmem:[%s239_s0 + $0x8] sm:$0xff]   ;;  %v175_v4 = vld [vmem:[%s239_s0] sm:$0xff]  }
   0x3   :  { %168 = vmatpush3.bf16.msra.mxu1 %v172_v1  ;;  %151 = vmatpush3.bf16.msra.mxu0 %v172_v1  ;;  %v136_v6 = vld [vmem:[%s240_s2] ss:$0 sm:$0xff] }
   0x4   :  { %167 = vmatprep.subr.bf16.mxu1 %v177_v0  ;;  %152 = vmatprep.subr.bf16.mxu0 %v177_v0 }
   0x7   :  { %169 = vmatpush3.bf16.msra.mxu1 %v173_v2  ;;  %153 = vmatpush3.bf16.msra.mxu0 %v173_v2 }
   0xa   :  { %159 = vmatmul.mubr.msk.bf16.vlgmr.msra.gmra.mrb[0].mxu1 %vm59_vm1, %v174_v3  ;;  %155 = vmatmul.mubr.msk.bf16.vlgmr.msra.gmra.mrb[0].mxu0 %vm59_vm1, %v175_v4 }
   0xb   :  { %162 = vmatprep.mubr.msk.bf16.mxu1 %vm178_vm0, %v177_v0 }
  0x12   :  { %163 = vmatmul.mubr.msk.bf16.gmra.mrb[4].mxu1 %vm59_vm1, %v176_v5 }
  0xdd   :  { %v111_v7 = vpop.f32.mrb[0].mxu1  ;;  %v103_v8 = vpop.f32.mrb[0].mxu0 }
  0xde   :  { %v112_v9 = vadd.f32 %v136_v6, %v111_v7  ;;  %v160_v10 = vpop.f32.mrb[1].mxu1  ;;  %v104_v11 = vadd.f32 %v136_v6, %v103_v8  ;;  %v156_v12 = vpop.f32.mrb[1].mxu0 }
  0xdf   :  { %v114_v13 = vpop.f32.mrb[2].mxu1  ;;  %v106_v14 = vpop.f32.mrb[2].mxu0 }
  0xe0   :  { %128 = vst [vmem:[%s241_s3 + $0x10] sm:$0xff] %v112_v9  ;;  %v115_v15 = vadd.f32 %v136_v6, %v114_v13  ;;  %v161_v16 = vpop.f32.mrb[3].mxu1  ;;  %126 = vst [vmem:[%s241_s3] sm:$0xff] %v104_v11  ;;  %v107_v17 = vadd.f32 %v136_v6, %v106_v14  ;;  %v157_v18 = vpop.f32.mrb[3].mxu0 }
  0xe2   :  { %129 = vst [vmem:[%s241_s3 + $0x18] sm:$0xff] %v115_v15  ;;  %127 = vst [vmem:[%s241_s3 + $0x8] sm:$0xff] %v107_v17 }
  0xe5   :  { %v119_v19 = vpop.f32.mrb[4].mxu1 }
  0xe6   :  { %v120_v20 = vadd.f32 %v136_v6, %v119_v19  ;;  %v164_v21 = vpop.f32.mrb[5].mxu1 }
  0xe7   :  { %v122_v22 = vpop.f32.mrb[6].mxu1 }
  0xe8   :  { %130 = vst [vmem:[%s241_s3 + $0x20] sm:$0xff] %v120_v20  ;;  %v123_v23 = vadd.f32 %v136_v6, %v122_v22  ;;  %v165_v24 = vpop.f32.mrb[7].mxu1 }
  0xea   :  { %131 = vst [vmem:[%s241_s3 + $0x28] sm:$0xff] %v123_v23 }

</bundles_post_ra>
